<compile_context>
chip_gen: v7x
topology: tpu7x:2x2x1
jax: 0.10.0
libtpu: 0.0.40
codegen_flags: <defaults>
</compile_context>

<pallas_src>
import functools
import math

import jax
import jax.numpy as jnp
from jax import lax
from jax.experimental import pallas as pl
from jax.experimental.pallas import tpu as pltpu

_LANE = 128
_NEG_PAD = -1e30        # finite (NOT -inf): keeps the shift / selects NaN-free


def _round_up(n, m):
    return ((n + m - 1) // m) * m


def _vmem_capacity_bytes():
    """Physical VMEM per core; falls back to the smallest (v7x) size."""
    try:
        cap = int(getattr(pltpu.get_tpu_info(), "vmem_capacity_bytes", 0))
        if cap > 0:
            return cap
    except Exception:
        pass
    return 64 * 1024 * 1024


def _sparsemax_kernel(x_ref, o_ref, *, c_real, chunk, use_bisection, n_bisect):
    x = x_ref[...].astype(jnp.float32)                     # (tm, Cp)
    tm, cp = x.shape

    # Row-max shift (sparsemax is shift invariant; matches the torch module).
    xs = x - jnp.max(x, axis=1, keepdims=True)             # row max -> 0

    if use_bisection:
        # f(tau) = sum_j max(xs_j - tau, 0) is strictly decreasing, f(tau*)=1,
        # tau* in [-1, 0) after the shift.  ~30 halvings localize tau* to
        # ~1e-9, then one exact closed-form refinement over the implied
        # support (elements exactly at tau contribute 0, so it stays exact).
        lo = jnp.full((tm, 1), -1.0, jnp.float32)
        hi = jnp.zeros((tm, 1), jnp.float32)

        def body(_, carry):
            lo, hi = carry
            mid = 0.5 * (lo + hi)
            f = jnp.sum(jnp.maximum(xs - mid, 0.0), axis=1, keepdims=True)
            gt = f > 1.0                                   # tau* > mid
            return jnp.where(gt, mid, lo), jnp.where(gt, hi, mid)

        lo, hi = lax.fori_loop(0, n_bisect, body, (lo, hi))
        tau0 = 0.5 * (lo + hi)                             # strictly < 0 -> k >= 1
        sup = xs > tau0
    else:
        # Exact sort-free support test, chunked over the reduction axis i so
        # live temporaries stay (tm, chunk, Cp) — no (tm, Cp, Cp) cube.
        xj = xs[:, None, :]                                # hoisted broadcast
        c = jnp.zeros((tm, cp), jnp.float32)
        s = jnp.zeros((tm, cp), jnp.float32)
        for i0 in range(0, c_real, chunk):                 # <= 4 static iters
            xi = xs[:, i0:min(i0 + chunk, cp)]             # (tm, cw)
            xib = xi[:, :, None]
            mask = xib >= xj                               # computed once
            c = c + jnp.sum(mask.astype(jnp.float32), axis=1)
            s = s + jnp.sum(jnp.where(mask, xib, 0.0), axis=1)
        # TODO(synk): exactly tied logits straddling the support boundary can
        # give a different (but tau-equivalent) support than the sorted ref.
        sup = (1.0 + c * xs) > s

    supf = sup.astype(jnp.float32)
    k = jnp.sum(supf, axis=1, keepdims=True)               # >= 1 per real row
    ssum = jnp.sum(jnp.where(sup, xs, 0.0), axis=1, keepdims=True)
    tau = (ssum - 1.0) / k                                 # exact division
    o_ref[...] = jnp.maximum(xs - tau, 0.0).astype(o_ref.dtype)


def _row_tile(n_rows, c_pad, itemsize, *, pairwise, chunk, vmem_budget):
    """Largest sublane-multiple row tile that fits the VMEM budget."""
    sub = max(8, 32 // itemsize)          # f32: 8, bf16: 16, int8/fp8: 32
    if pairwise:
        # 2x in + 2x out blocks, xs/c/s/sup f32, (tm, chunk, Cp) mask+select
        per_row = c_pad * (4 * itemsize + 8 * 4 + 2 * chunk * 4)
    else:
        # 2x in + 2x out blocks, xs f32, relu temp, small carries
        per_row = c_pad * (4 * itemsize + 5 * 4)
    tm = vmem_budget // max(per_row, 1)
    tm = max(sub, (tm // sub) * sub)
    tm = min(tm, 4096)
    # v7x megacore: keep >= 2 grid steps when the row count allows it.
    tm = min(tm, max(sub, _round_up(max(1, (n_rows + 1) // 2), sub)))
    # Never exceed the sublane-rounded row count.
    tm = min(tm, _round_up(n_rows, sub))
    return int(tm)


def sparsemax(x, dim=-1):
    """Sparsemax along `dim`; same shape and dtype as `x` (forward only)."""
    nd = x.ndim
    if nd == 0:
        return jnp.ones_like(x)
    axis = dim % nd
    xm = jnp.moveaxis(x, axis, -1)
    moved_shape = xm.shape
    C = moved_shape[-1]
    N = math.prod(moved_shape[:-1]) if nd > 1 else 1
    x2 = xm.reshape(N, C)

    # Lane-pad classes to a multiple of 128 (lane-dense loads/stores).  Padded
    # classes (-1e30) can never enter the support, so tau is unchanged.
    C_pad = _round_up(C, _LANE)
    if C_pad != C:
        x2 = jnp.pad(x2, ((0, 0), (0, C_pad - C)), constant_values=_NEG_PAD)

    itemsize = jnp.dtype(x2.dtype).itemsize
    use_bisection = C > 128                 # O(C^2) exact test only for small C
    chunk = min(32, _round_up(C, 8))
    n_bisect = 30

    vmem_cap = _vmem_capacity_bytes()
    tm = _row_tile(N, C_pad, itemsize, pairwise=not use_bisection,
                   chunk=chunk, vmem_budget=vmem_cap // 2)
    grid = (pl.cdiv(N, tm),)

    flops = 4 * N * (C_pad * n_bisect if use_bisection else C * C)
    cost = pl.CostEstimate(flops=int(flops), transcendentals=0,
                           bytes_accessed=int(2 * N * C * itemsize))

    out2 = pl.pallas_call(
        functools.partial(_sparsemax_kernel, c_real=C, chunk=chunk,
                          use_bisection=use_bisection, n_bisect=n_bisect),
        out_shape=jax.ShapeDtypeStruct((N, C_pad), x2.dtype),
        grid=grid,
        in_specs=[pl.BlockSpec((tm, C_pad), lambda i: (i, 0))],
        out_specs=pl.BlockSpec((tm, C_pad), lambda i: (i, 0)),
        compiler_params=pltpu.CompilerParams(
            dimension_semantics=("parallel",),
            vmem_limit_bytes=int(vmem_cap * 0.7)),
        cost_estimate=cost,
    )(x2)

    out2 = out2 if C_pad == C else out2[:, :C]
    out = out2.reshape(moved_shape)
    return jnp.moveaxis(out, -1, axis)


class Sparsemax:
    """Functional analogue of the PyTorch Sparsemax nn.Module (forward only)."""
    # TODO(synk): the module's custom backward() (autograd grad) is not implemented.

    def __init__(self, dim=None):
        self.dim = -1 if dim is None else dim

    def __call__(self, x):
        return sparsemax(x, dim=self.dim)


def _ref_sparsemax(x, dim=-1):
    """Pure-JAX transcription of the torch Sparsemax.forward."""
    xm = jnp.moveaxis(x, dim, -1)
    shp = xm.shape
    x2 = xm.reshape(-1, shp[-1]).astype(jnp.float32)
    x2 = x2 - jnp.max(x2, axis=1, keepdims=True)
    zs = -jnp.sort(-x2, axis=1)
    C = x2.shape[1]
    rng = jnp.arange(1, C + 1, dtype=x2.dtype)
    bound = 1.0 + rng * zs
    cs = jnp.cumsum(zs, axis=1)
    is_gt = (bound > cs).astype(x2.dtype)
    k = jnp.max(is_gt * rng, axis=1, keepdims=True)
    ssum = jnp.sum(is_gt * zs, axis=1, keepdims=True)
    tau = (ssum - 1.0) / k
    out = jnp.maximum(x2 - tau, 0.0).reshape(shp)
    return jnp.moveaxis(out, -1, dim).astype(x.dtype)


if __name__ == "__main__":
    key = jax.random.PRNGKey(0)
    k1, k2, k3 = jax.random.split(key, 3)

    # 2-D (batch, logits): small-C exact pairwise path (32 -> 128 lane pad).
    N, C = 8, 32
    x = jax.random.normal(k1, (N, C), dtype=jnp.float32) * 3.0
    out = Sparsemax()(x)
    jax.block_until_ready(out)
    ref = _ref_sparsemax(x, -1)
    assert out.shape == x.shape
    assert jnp.allclose(out, ref, atol=1e-5, rtol=1e-5)
    assert jnp.allclose(jnp.sum(out, axis=-1), 1.0, atol=1e-5)
    assert bool(jnp.all(out >= 0.0))

    # 3-D over the last dim and over a middle dim (exercises moveaxis/reshape).
    x3 = jax.random.normal(k2, (2, 4, 16), dtype=jnp.float32)
    out3 = sparsemax(x3, dim=-1)
    jax.block_until_ready(out3)
    assert jnp.allclose(out3, _ref_sparsemax(x3, -1), atol=1e-5, rtol=1e-5)
    out3b = sparsemax(x3, dim=1)
    jax.block_until_ready(out3b)
    assert jnp.allclose(out3b, _ref_sparsemax(x3, 1), atol=1e-5, rtol=1e-5)

    # Larger class count: bisection path + lane padding + ragged last row block.
    x4 = jax.random.normal(k3, (4, 300), dtype=jnp.float32) * 2.0
    out4 = sparsemax(x4, dim=-1)
    jax.block_until_ready(out4)
    assert jnp.allclose(out4, _ref_sparsemax(x4, -1), atol=1e-5, rtol=1e-5)
    assert jnp.allclose(jnp.sum(out4, axis=-1), 1.0, atol=1e-5)

    print("KERNEL_OK")
</pallas_src>

<mosaic_0001>
module attributes {stable_mosaic.version = 11 : i64} {
  func.func @_sparsemax_kernel(%arg0: i32, %arg1: memref<8x128xf32, #tpu.memory_space<vmem>>, %arg2: memref<8x128xf32, #tpu.memory_space<vmem>>) attributes {dimension_semantics = [#tpu.dimension_semantics<parallel>], iteration_bounds = array<i64: 1>, scalar_prefetch = 0 : i64, scratch_operands = 0 : i64, tpu.core_type = #tpu.core_type<tc>, window_params = [{transform_indices = @transform_0, window_bounds = array<i64: 8, 128>}, {transform_indices = @transform_1, window_bounds = array<i64: 8, 128>}]} {
    %c0 = arith.constant 0 : index
    %c0_0 = arith.constant 0 : index
    %0 = vector.load %arg1[%c0, %c0_0] : memref<8x128xf32, #tpu.memory_space<vmem>>, vector<8x128xf32>
    %cst = arith.constant dense<0xFF800000> : vector<8xf32>
    %1 = vector.multi_reduction <maximumf>, %0, %cst [1] : vector<8x128xf32> to vector<8xf32>
    %2 = vector.shape_cast %1 : vector<8xf32> to vector<8x1xf32>
    %3 = vector.broadcast %2 : vector<8x1xf32> to vector<8x128xf32>
    %4 = arith.subf %0, %3 : vector<8x128xf32>
    %5 = vector.shape_cast %4 : vector<8x128xf32> to vector<8x1x128xf32>
    %cst_1 = arith.constant 0.000000e+00 : f32
    %6 = vector.broadcast %cst_1 : f32 to vector<8x128xf32>
    %cst_2 = arith.constant 0.000000e+00 : f32
    %7 = vector.broadcast %cst_2 : f32 to vector<8x128xf32>
    %8 = vector.extract_strided_slice %4 {offsets = [0, 0], sizes = [8, 32], strides = [1, 1]} : vector<8x128xf32> to vector<8x32xf32>
    %9 = vector.shape_cast %8 : vector<8x32xf32> to vector<8x32x1xf32>
    %10 = vector.broadcast %9 : vector<8x32x1xf32> to vector<8x32x128xf32>
    %11 = vector.broadcast %5 : vector<8x1x128xf32> to vector<8x32x128xf32>
    %12 = arith.cmpf oge, %10, %11 : vector<8x32x128xf32>
    %13 = arith.extui %12 : vector<8x32x128xi1> to vector<8x32x128xi32>
    %14 = arith.sitofp %13 : vector<8x32x128xi32> to vector<8x32x128xf32>
    %cst_3 = arith.constant dense<0.000000e+00> : vector<8x128xf32>
    %15 = vector.multi_reduction <add>, %14, %cst_3 [1] : vector<8x32x128xf32> to vector<8x128xf32>
    %16 = arith.addf %6, %15 : vector<8x128xf32>
    %cst_4 = arith.constant 0.000000e+00 : f32
    %17 = vector.shape_cast %9 : vector<8x32x1xf32> to vector<8x32x1xf32>
    %18 = vector.broadcast %17 : vector<8x32x1xf32> to vector<8x32x128xf32>
    %19 = vector.broadcast %cst_4 : f32 to vector<8x32x128xf32>
    %20 = arith.select %12, %18, %19 : vector<8x32x128xi1>, vector<8x32x128xf32>
    %cst_5 = arith.constant dense<0.000000e+00> : vector<8x128xf32>
    %21 = vector.multi_reduction <add>, %20, %cst_5 [1] : vector<8x32x128xf32> to vector<8x128xf32>
    %22 = arith.addf %7, %21 : vector<8x128xf32>
    %23 = arith.mulf %16, %4 : vector<8x128xf32>
    %cst_6 = arith.constant 1.000000e+00 : f32
    %24 = vector.broadcast %cst_6 : f32 to vector<8x128xf32>
    %25 = arith.addf %24, %23 : vector<8x128xf32>
    %26 = arith.cmpf ogt, %25, %22 : vector<8x128xf32>
    %27 = arith.extui %26 : vector<8x128xi1> to vector<8x128xi32>
    %28 = arith.sitofp %27 : vector<8x128xi32> to vector<8x128xf32>
    %cst_7 = arith.constant dense<0.000000e+00> : vector<8xf32>
    %29 = vector.multi_reduction <add>, %28, %cst_7 [1] : vector<8x128xf32> to vector<8xf32>
    %30 = vector.shape_cast %29 : vector<8xf32> to vector<8x1xf32>
    %cst_8 = arith.constant 0.000000e+00 : f32
    %31 = vector.broadcast %cst_8 : f32 to vector<8x128xf32>
    %32 = arith.select %26, %4, %31 : vector<8x128xi1>, vector<8x128xf32>
    %cst_9 = arith.constant dense<0.000000e+00> : vector<8xf32>
    %33 = vector.multi_reduction <add>, %32, %cst_9 [1] : vector<8x128xf32> to vector<8xf32>
    %34 = vector.shape_cast %33 : vector<8xf32> to vector<8x1xf32>
    %cst_10 = arith.constant 1.000000e+00 : f32
    %35 = vector.broadcast %cst_10 : f32 to vector<8x1xf32>
    %36 = arith.subf %34, %35 : vector<8x1xf32>
    %37 = arith.divf %36, %30 : vector<8x1xf32>
    %38 = vector.broadcast %37 : vector<8x1xf32> to vector<8x128xf32>
    %39 = arith.subf %4, %38 : vector<8x128xf32>
    %cst_11 = arith.constant 0.000000e+00 : f32
    %40 = vector.broadcast %cst_11 : f32 to vector<8x128xf32>
    %41 = arith.maximumf %39, %40 : vector<8x128xf32>
    %c0_12 = arith.constant 0 : index
    %c0_13 = arith.constant 0 : index
    %42 = vector.load %arg2[%c0_12, %c0_13] : memref<8x128xf32, #tpu.memory_space<vmem>>, vector<8x128xf32>
    tpu.vector_store %arg2[%c0_12, %c0_13], %41 {strides = array<i32>} : memref<8x128xf32, #tpu.memory_space<vmem>>, vector<8x128xf32>,
    return
  }
  func.func @transform_0(%arg0: i32) -> (i32, i32) {
    %c0_i32 = arith.constant 0 : i32
    %c0_i32_0 = arith.constant 0 : i32
    return %arg0, %c0_i32 : i32, i32
  }
  func.func @transform_1(%arg0: i32) -> (i32, i32) {
    %c0_i32 = arith.constant 0 : i32
    %c0_i32_0 = arith.constant 0 : i32
    return %arg0, %c0_i32 : i32, i32
  }
}

</mosaic_0001>

<bundles_post_ra>
// kernel: tpu_custom_call.1
= control target key start
LH: loop header
LB: loop body
LE: loop exit
PB: predicated region body
PF: predicated region fallthrough
CT: control target
= control target key end

     0   :  { %6 = vsyncpa [#allocation3], 0  ;;  %s1119_s0 = inlined_call_operand.hbm [shape: f32[8,128], index: 0, kind: input, shape index: {}]   ;;  %s1120_s1 = inlined_call_operand.hbm [shape: f32[8,128], index: 1, kind: output, shape index: {}]  }
   0x1   :  { %7 = vsyncpa [#allocation4], 0  ;;  %s791_s6 = smov [#allocation2]   ;;  %s743_s10 = scalar_lea.hbm %s1119_s0, 128 }
   0x2   :  { %s14_s7 = sshll.u32 %s791_s6, 4  ;;  %p744_p0 = scmp.ne.s32.totalorder %s1119_s0, %s743_s10  ;;  %s15_s7 = int_to_ptr.vmem [resolvable:$true] %s14_s7 }
   0x3   :  { %p747_p1 = scmp.lt.u32.totalorder %s743_s10, %s1119_s0 }
   0x5   :  { %p749_p2 = pnand %p747_p1, %p744_p0 }
   0x7   :  { %752 = shalt.err (!%p749_p2)
}
   0x8   :  { %s753_s15 = scalar_lea.vmem %s15_s7, 128  ;;  %p758_p4 = scmp.lt.s32.totalorder %s15_s7, %s15_s7 }
   0x9   :  { %p754_p3 = scmp.ne.s32.totalorder %s15_s7, %s753_s15  ;;  %p759_p5 = scmp.lt.s32.totalorder %s753_s15, %s753_s15 }
   0xb   :  { %p760_p6 = por %p759_p5, %p758_p4 }
   0xd   :  { %p761_p7 = pnand %p760_p6, %p754_p3 }
   0xf   :  { %764 = shalt.err (!%p761_p7)
}
  0x10   :  { %17 = dma.hbm_to_vmem [thread:$0]  %s1119_s0, 128, %s15_s7, [#allocation3]  }
  0x11   :  { %787 = dma.done.wait [#allocation3], 128  }
  0x12   :  { %788 = vsyncadd [#allocation3], 4294967168  ;;  %v21_v0 = vld [vmem:[#allocation2] sm:$0xff]  ;;  %v30_v1 = vlaneseq  ;;  %v792_v2 = vmov 1966171168   ;;  %s794_s0 = smov [#allocation5]  }
  0x13   :  { %22 = vmax.xlane.f32.xlu0 %v21_v0  ;;  %v28_v3 = vunpack.c.l.s4 %v792_v2  ;;  %s687_s18 = sshll.u32 %s794_s0, 4  ;;  %s688_s18 = int_to_ptr.vmem [resolvable:$true] %s687_s18 }
  0x14   :  { %v31_v4 = vshrl.u32 %v30_v1, 7  ;;  %v793_v1 = vmov 0.0   ;;  %s765_s19 = scalar_lea.vmem %s688_s18, 128  ;;  %p770_p9 = scmp.lt.s32.totalorder %s688_s18, %s688_s18 }
  0x15   :  { %v29_v5 = vunpack.c.0.s8 %v28_v3  ;;  %p766_p8 = scmp.ne.s32.totalorder %s688_s18, %s765_s19  ;;  %p771_p10 = scmp.lt.s32.totalorder %s765_s19, %s765_s19 }
  0x16   :  { %v96_v6 = vsub.s32 1, %v31_v4  ;;  %v115_v10 = vsub.s32 2, %v31_v4  ;;  %v134_v12 = vsub.s32 3, %v31_v4  ;;  %v153_v16 = vsub.s32 4, %v31_v4 }
  0x17   :  { %v32_v9 = vsub.s32 %v29_v5, %v31_v4  ;;  %v77_v21 = vsub.s32 0, %v31_v4  ;;  %v172_v40 = vsub.s32 5, %v31_v4  ;;  %v191_v42 = vsub.s32 6, %v31_v4  ;;  %p772_p11 = por %p771_p10, %p770_p9 }
  0x18   :  { %v210_v44 = vsub.s32 7, %v31_v4 }
  0x19   :  { %p773_p12 = pnand %p772_p11, %p766_p8 }
  0xa0   :  { %v23_v7 = vpop.xlane.xlu0 %22 }
  0xa1   :  { %v817_v8 = vsub.f32 %v21_v0, %v23_v7 }
  0xa3   :  { %v97_v11 = vrot.slane %v817_v8, %v96_v6  ;;  %v33_v13 = vrot.slane %v817_v8, %v32_v9  ;;  %v26_v14 = vcombine.high %v817_v8, %v817_v8  ;;  %v116_v15 = vrot.slane %v817_v8, %v115_v10 }
  0xa4   :  { %v135_v17 = vrot.slane %v817_v8, %v134_v12  ;;  %v154_v25 = vrot.slane %v817_v8, %v153_v16  ;;  %v78_v38 = vrot.slane %v817_v8, %v77_v21  ;;  %v173_v41 = vrot.slane %v817_v8, %v172_v40 }
  0xa5   :  { %103 = vbcast.lane.b32.xlu1 %v97_v11, 264  ;;  %99 = vbcast.lane.b32.xlu0 %v97_v11, 256  ;;  %v41_v18 = vcombine.high %v33_v13, %v33_v13  ;;  %v49_v19 = vrot.slane %v33_v13, %v32_v9  ;;  %v40_v20 = vrot.slane %v26_v14, %v32_v9  ;;  %v557_v0 = vrot.slane %v817_v8, 3 }
  0xa6   :  { %v192_v43 = vrot.slane %v817_v8, %v191_v42  ;;  %v211_v45 = vrot.slane %v817_v8, %v210_v44  ;;  %v555_v4 = vrot.slane %v817_v8, 1  ;;  %v558_v6 = vrot.slane %v817_v8, 4 }
  0xa7   :  { %v63_v22 = vrot.slane %v41_v18, %v32_v9  ;;  %v71_v23 = vcombine.high %v49_v19, %v49_v19  ;;  %v56_v24 = vrot.slane %v40_v20, %v32_v9  ;;  %v826_v26 = vrot.slane %v49_v19, %v77_v21 }
  0xa8   :  { %v42_v27 = vcombine.high %v40_v20, %v40_v20  ;;  %v559_v10 = vrot.slane %v817_v8, 5 }
  0xa9   :  { %118 = vbcast.lane.b32.xlu1 %v116_v15, 256  ;;  %141 = vbcast.lane.b32.xlu0 %v135_v17, 264  ;;  %v828_v28 = vrot.slane %v63_v22, %v77_v21  ;;  %v830_v29 = vrot.slane %v71_v23, %v77_v21  ;;  %v73_v30 = vcombine.high %v63_v22, %v63_v22 }
  0xaa   :  { %v832_v31 = vrot.slane %v56_v24, %v77_v21  ;;  %v70_v32 = vrot.slane %v42_v27, %v32_v9  ;;  %v72_v33 = vcombine.high %v56_v24, %v56_v24  ;;  %v556_v9 = vrot.slane %v817_v8, 2 }
  0xab   :  { %v834_v34 = vrot.slane %v73_v30, %v77_v21 }
  0xac   :  { %v836_v35 = vrot.slane %v70_v32, %v77_v21  ;;  %v838_v36 = vrot.slane %v72_v33, %v77_v21  ;;  %v74_v37 = vcombine.high %v70_v32, %v70_v32 }
  0xad   :  { %122 = vbcast.lane.b32.xlu1 %v116_v15, 264  ;;  %156 = vbcast.lane.b32.xlu0 %v154_v25, 256 }
  0xae   :  { %v841_v39 = vrot.slane %v74_v37, %v77_v21 }
  0xb1   :  { %88 = vbcast.lane.b32.xlu0 %v78_v38, 272  ;;  %80 = vbcast.lane.b32.xlu1 %v78_v38, 256 }
  0xb5   :  { %145 = vbcast.lane.b32.xlu0 %v135_v17, 272  ;;  %84 = vbcast.lane.b32.xlu1 %v78_v38, 264 }
  0xb9   :  { %179 = vbcast.lane.b32.xlu0 %v173_v41, 264  ;;  %107 = vbcast.lane.b32.xlu1 %v97_v11, 272 }
  0xbd   :  { %164 = vbcast.lane.b32.xlu0 %v154_v25, 272  ;;  %137 = vbcast.lane.b32.xlu1 %v135_v17, 256 }
  0xc1   :  { %198 = vbcast.lane.b32.xlu0 %v192_v43, 264  ;;  %126 = vbcast.lane.b32.xlu1 %v116_v15, 272 }
  0xc5   :  { %149 = vbcast.lane.b32.xlu0 %v135_v17, 280  ;;  %160 = vbcast.lane.b32.xlu1 %v154_v25, 264 }
  0xc9   :  { %213 = vbcast.lane.b32.xlu0 %v211_v45, 256  ;;  %111 = vbcast.lane.b32.xlu1 %v97_v11, 280  ;;  %v560_v11 = vrot.slane %v817_v8, 6 }
  0xcd   :  { %168 = vbcast.lane.b32.xlu0 %v154_v25, 280  ;;  %175 = vbcast.lane.b32.xlu1 %v173_v41, 256 }
  0xd1   :  { %187 = vbcast.lane.b32.xlu0 %v173_v41, 280  ;;  %130 = vbcast.lane.b32.xlu1 %v116_v15, 280 }
  0xd5   :  { %206 = vbcast.lane.b32.xlu0 %v192_v43, 280  ;;  %194 = vbcast.lane.b32.xlu1 %v192_v43, 256 }
  0xd9   :  { %92 = vbcast.lane.b32.xlu1 %v78_v38, 280 }
  0xdd   :  { %183 = vbcast.lane.b32.xlu1 %v173_v41, 272 }
  0xe1   :  { %217 = vbcast.lane.b32.xlu1 %v211_v45, 264 }
  0xe5   :  { %202 = vbcast.lane.b32.xlu1 %v192_v43, 272 }
  0xe9   :  { %221 = vbcast.lane.b32.xlu1 %v211_v45, 272 }
  0xed   :  { %225 = vbcast.lane.b32.xlu1 %v211_v45, 280 }
 0x117   :  { %v104_v46 = vpop.permute.xlu1 %103  ;;  %v100_v47 = vpop.permute.xlu0 %99 }
 0x118   :  { %vm272_vm0 = vcmp.ge.f32.partialorder %v104_v46, %v828_v28  ;;  %vm271_vm1 = vcmp.ge.f32.partialorder %v100_v47, %v828_v28 }
 0x119   :  { %v448_v48 = vsel %vm272_vm0, %v104_v46, 0.0  ;;  %v447_v49 = vsel %vm271_vm1, %v100_v47, 0.0  ;;  %v701_v2 = vsel %vm272_vm0, 1.0, %v793_v1  ;;  %v700_v3 = vsel %vm271_vm1, 1.0, %v793_v1 }
 0x11a   :  { %v484_v50 = vadd.f32 %v448_v48, %v447_v49  ;;  %v372_v12 = vadd.f32 %v701_v2, %v700_v3 }
 0x11b   :  { %v119_v51 = vpop.permute.xlu1 %118  ;;  %v142_v52 = vpop.permute.xlu0 %141 }
 0x11c   :  { %vm275_vm2 = vcmp.ge.f32.partialorder %v119_v51, %v830_v29  ;;  %vm280_vm5 = vcmp.ge.f32.partialorder %v142_v52, %v834_v34 }
 0x11d   :  { %v451_v53 = vsel %vm275_vm2, %v119_v51, 0.0  ;;  %v704_v13 = vsel %vm275_vm2, 1.0, %v793_v1  ;;  %v709_v16 = vsel %vm280_vm5, 1.0, %v793_v1  ;;  %v456_v19 = vsel %vm280_vm5, %v142_v52, 0.0 }
 0x11f   :  { %v123_v54 = vpop.permute.xlu1 %122  ;;  %v157_v55 = vpop.permute.xlu0 %156 }
 0x120   :  { %vm276_vm3 = vcmp.ge.f32.partialorder %v123_v54, %v830_v29  ;;  %vm283_vm7 = vcmp.ge.f32.partialorder %v157_v55, %v832_v31 }
 0x121   :  { %v452_v56 = vsel %vm276_vm3, %v123_v54, 0.0  ;;  %v705_v20 = vsel %vm276_vm3, 1.0, %v793_v1  ;;  %v712_v23 = vsel %vm283_vm7, 1.0, %v793_v1  ;;  %v459_v27 = vsel %vm283_vm7, %v157_v55, 0.0 }
 0x122   :  { %v493_v57 = vadd.f32 %v452_v56, %v451_v53  ;;  %v381_v41 = vadd.f32 %v705_v20, %v704_v13 }
 0x123   :  { %v89_v58 = vpop.permute.xlu0 %88  ;;  %v81_v59 = vpop.permute.xlu1 %80 }
 0x124   :  { %vm267_vm8 = vcmp.ge.f32.partialorder %v81_v59, %v826_v26  ;;  %vm269_vm10 = vcmp.ge.f32.partialorder %v89_v58, %v826_v26 }
 0x125   :  { %v696_v24 = vsel %vm267_vm8, 1.0, %v793_v1  ;;  %v443_v25 = vsel %vm267_vm8, %v81_v59, 0.0  ;;  %v698_v42 = vsel %vm269_vm10, 1.0, %v793_v1  ;;  %v445_v43 = vsel %vm269_vm10, %v89_v58, 0.0 }
 0x127   :  { %v146_v60 = vpop.permute.xlu0 %145  ;;  %v85_v61 = vpop.permute.xlu1 %84 }
 0x128   :  { %vm268_vm6 = vcmp.ge.f32.partialorder %v85_v61, %v826_v26  ;;  %vm281_vm11 = vcmp.ge.f32.partialorder %v146_v60, %v834_v34 }
 0x129   :  { %v697_v17 = vsel %vm268_vm6, 1.0, %v793_v1  ;;  %v444_v18 = vsel %vm268_vm6, %v85_v61, 0.0  ;;  %v710_v45 = vsel %vm281_vm11, 1.0, %v793_v1  ;;  %v457_v46 = vsel %vm281_vm11, %v146_v60, 0.0 }
 0x12a   :  { %v363_v30 = vadd.f32 %v697_v17, %v696_v24  ;;  %v475_v32 = vadd.f32 %v444_v18, %v443_v25 }
 0x12b   :  { %v180_v62 = vpop.permute.xlu0 %179  ;;  %v108_v63 = vpop.permute.xlu1 %107 }
 0x12c   :  { %vm273_vm4 = vcmp.ge.f32.partialorder %v108_v63, %v828_v28  ;;  %vm288_vm12 = vcmp.ge.f32.partialorder %v180_v62, %v836_v35  ;;  %v918_v52 = vadd.f32 %v698_v42, %v363_v30  ;;  %v920_v53 = vadd.f32 %v475_v32, %v445_v43 }
 0x12d   :  { %v449_v5 = vsel %vm273_vm4, %v108_v63, 0.0  ;;  %v702_v47 = vsel %vm273_vm4, 1.0, %v793_v1  ;;  %v915_v49 = vsel %vm288_vm12, 1.0, %v793_v1  ;;  %v464_v56 = vsel %vm288_vm12, %v180_v62, 0.0 }
 0x12e   :  { %v872_v7 = vadd.f32 %v484_v50, %v449_v5 }
 0x12f   :  { %v165_v14 = vpop.permute.xlu0 %164  ;;  %v138_v15 = vpop.permute.xlu1 %137 }
 0x130   :  { %vm279_vm9 = vcmp.ge.f32.partialorder %v138_v15, %v834_v34  ;;  %vm285_vm14 = vcmp.ge.f32.partialorder %v165_v14, %v832_v31 }
 0x131   :  { %v708_v21 = vsel %vm279_vm9, 1.0, %v793_v1  ;;  %v455_v22 = vsel %vm279_vm9, %v138_v15, 0.0  ;;  %v461_v3 = vsel %vm285_vm14, %v165_v14, 0.0 }
 0x132   :  { %v390_v38 = vadd.f32 %v709_v16, %v708_v21  ;;  %v502_v40 = vadd.f32 %v456_v19, %v455_v22 }
 0x133   :  { %v199_v33 = vpop.permute.xlu0 %198  ;;  %v127_v37 = vpop.permute.xlu1 %126 }
 0x134   :  { %vm277_vm13 = vcmp.ge.f32.partialorder %v127_v37, %v830_v29  ;;  %v391_v54 = vadd.f32 %v710_v45, %v390_v38  ;;  %v503_v55 = vadd.f32 %v502_v40, %v457_v46  ;;  %vm292_vm1 = vcmp.ge.f32.partialorder %v199_v33, %v838_v36 }
 0x135   :  { %v453_v44 = vsel %vm277_vm13, %v127_v37, 0.0  ;;  %v706_v62 = vsel %vm277_vm13, 1.0, %v793_v1  ;;  %v944_v24 = vsel %vm292_vm1, 1.0, %v793_v1  ;;  %v948_v25 = vsel %vm292_vm1, %v199_v33, 0.0 }
 0x136   :  { %v910_v48 = vadd.f32 %v493_v57, %v453_v44  ;;  %v373_v57 = vadd.f32 %v702_v47, %v372_v12 }
 0x137   :  { %v150_v50 = vpop.permute.xlu0 %149  ;;  %v161_v51 = vpop.permute.xlu1 %160 }
 0x138   :  { %vm282_vm15 = vcmp.ge.f32.partialorder %v150_v50, %v834_v34  ;;  %vm284_vm0 = vcmp.ge.f32.partialorder %v161_v51, %v832_v31  ;;  %v714_v34 = vsel %vm285_vm14, 1.0, %v793_v1 }
 0x139   :  { %v711_v58 = vsel %vm282_vm15, 1.0, %v793_v1  ;;  %v458_v59 = vsel %vm282_vm15, %v150_v50, 0.0  ;;  %v713_v63 = vsel %vm284_vm0, 1.0, %v793_v1  ;;  %v460_v2 = vsel %vm284_vm0, %v161_v51, 0.0 }
 0x13a   :  { %v392_v60 = vadd.f32 %v711_v58, %v391_v54  ;;  %v504_v61 = vadd.f32 %v503_v55, %v458_v59  ;;  %v399_v16 = vadd.f32 %v713_v63, %v712_v23  ;;  %v511_v17 = vadd.f32 %v460_v2, %v459_v27 }
 0x13b   :  { %v214_v5 = vpop.permute.xlu0 %213  ;;  %v112_v12 = vpop.permute.xlu1 %111 }
 0x13c   :  { %v393_v13 = vrot.slane %v392_v60, 4  ;;  %v505_v15 = vrot.slane %v504_v61, 4  ;;  %vm295_vm2 = vcmp.ge.f32.partialorder %v214_v5, %v841_v39  ;;  %vm274_vm3 = vcmp.ge.f32.partialorder %v112_v12, %v828_v28 }
 0x13d   :  { %v703_v18 = vsel %vm274_vm3, 1.0, %v793_v1  ;;  %v450_v19 = vsel %vm274_vm3, %v112_v12, 0.0  ;;  %v382_v28 = vadd.f32 %v706_v62, %v381_v41  ;;  %v953_v23 = vsel %vm295_vm2, 1.0, %v793_v1 }
 0x13e   :  { %v394_v14 = vadd.f32 %v393_v13, %v392_v60  ;;  %v506_v20 = vadd.f32 %v505_v15, %v504_v61  ;;  %v374_v21 = vadd.f32 %v703_v18, %v373_v57  ;;  %v486_v22 = vadd.f32 %v872_v7, %v450_v19 }
 0x13f   :  { %v169_v27 = vpop.permute.xlu0 %168  ;;  %v176_v30 = vpop.permute.xlu1 %175  ;;  %v400_v40 = vadd.f32 %v714_v34, %v399_v16  ;;  %v512_v42 = vadd.f32 %v511_v17, %v461_v3  ;;  %v961_v59 = vsel %vm295_vm2, %v214_v5, 0.0  ;;  %vm619_vm2 = vcmask 1041409  }
 0x140   :  { %v395_v32 = vrot.slane %v394_v14, 2  ;;  %v507_v37 = vrot.slane %v506_v20, 2  ;;  %v375_v7 = vrot.slane %v374_v21, 4  ;;  %v487_v38 = vrot.slane %v486_v22, 4 }
 0x141   :  { %vm286_vm4 = vcmp.ge.f32.partialorder %v169_v27, %v832_v31  ;;  %vm287_vm5 = vcmp.ge.f32.partialorder %v176_v30, %v836_v35 }
 0x142   :  { %v396_v33 = vadd.f32 %v395_v32, %v394_v14  ;;  %v508_v43 = vadd.f32 %v507_v37, %v506_v20  ;;  %v376_v41 = vadd.f32 %v375_v7, %v374_v21  ;;  %v488_v44 = vadd.f32 %v487_v38, %v486_v22 }
 0x143   :  { %v715_v45 = vsel %vm286_vm4, 1.0, %v793_v1  ;;  %v462_v46 = vsel %vm286_vm4, %v169_v27, 0.0  ;;  %v716_v47 = vsel %vm287_vm5, 1.0, %v793_v1  ;;  %v463_v50 = vsel %vm287_vm5, %v176_v30, 0.0  ;;  %v188_v51 = vpop.permute.xlu0 %187  ;;  %v131_v54 = vpop.permute.xlu1 %130 }
 0x144   :  { %v397_v55 = vrot.slane %v396_v33, 1  ;;  %v509_v57 = vrot.slane %v508_v43, 1  ;;  %v377_v58 = vrot.slane %v376_v41, 2  ;;  %v489_v31 = vrot.slane %v488_v44, 2 }
 0x145   :  { %v401_v60 = vadd.f32 %v715_v45, %v400_v40  ;;  %v513_v61 = vadd.f32 %v512_v42, %v462_v46  ;;  %v964_v63 = vadd.f32 %v915_v49, %v716_v47  ;;  %v966_v62 = vadd.f32 %v464_v56, %v463_v50 }
 0x146   :  { %v398_v2 = vadd.f32 %v397_v55, %v396_v33  ;;  %v378_v34 = vadd.f32 %v377_v58, %v376_v41  ;;  %v490_v3 = vadd.f32 %v489_v31, %v488_v44  ;;  %vm290_vm6 = vcmp.ge.f32.partialorder %v188_v51, %v836_v35 }
 0x147   :  { %v402_v12 = vrot.slane %v401_v60, 4  ;;  %v514_v13 = vrot.slane %v513_v61, 4  ;;  %vm278_vm7 = vcmp.ge.f32.partialorder %v131_v54, %v830_v29  ;;  %v195_v15 = vpop.permute.xlu1 %194  ;;  %v510_v16 = vadd.f32 %v509_v57, %v508_v43  ;;  %v207_v49 = vpop.permute.xlu0 %206 }
 0x148   :  { %v573_v5 = vmul.f32 %v557_v0, %v398_v2  ;;  %v379_v17 = vrot.slane %v378_v34, 1  ;;  %v491_v18 = vrot.slane %v490_v3, 1  ;;  %v973_v20 = vsel %vm290_vm6, 1.0, %v793_v1 }
 0x149   :  { %v403_v19 = vadd.f32 %v402_v12, %v401_v60  ;;  %v515_v14 = vadd.f32 %v514_v13, %v513_v61  ;;  %v707_v56 = vsel %vm278_vm7, 1.0, %v793_v1  ;;  %v978_v27 = vsel %vm290_vm6, %v188_v51, 0.0 }
 0x14a   :  { %v581_v21 = vadd.f32 1.0, %v573_v5  ;;  %v380_v22 = vadd.f32 %v379_v17, %v378_v34  ;;  %v383_v30 = vadd.f32 %v707_v56, %v382_v28  ;;  %v454_v7 = vsel %vm278_vm7, %v131_v54, 0.0 }
 0x14b   :  { %v404_v32 = vrot.slane %v403_v19, 2  ;;  %v516_v37 = vrot.slane %v515_v14, 2  ;;  %vm294_vm8 = vcmp.ge.f32.partialorder %v207_v49, %v838_v36  ;;  %v93_v38 = vpop.permute.xlu1 %92  ;;  %v495_v33 = vadd.f32 %v910_v48, %v454_v7 }
 0x14c   :  { %vm589_vm9 = vcmp.gt.f32.partialorder %v581_v21, %v510_v16  ;;  %v571_v40 = vmul.f32 %v555_v4, %v380_v22  ;;  %v384_v42 = vrot.slane %v383_v30, 4  ;;  %v492_v45 = vadd.f32 %v491_v18, %v490_v3 }
 0x14d   :  { %v987_v43 = vsel %vm589_vm9, 1.0, %v793_v1  ;;  %v991_v28 = vsel %vm589_vm9, %v557_v0, 0.0  ;;  %v405_v41 = vadd.f32 %v404_v32, %v403_v19  ;;  %v517_v29 = vadd.f32 %v516_v37, %v515_v14 }
 0x14e   :  { %v624_v44 = vrot.slane %v987_v43, 5  ;;  %v579_v46 = vadd.f32 1.0, %v571_v40  ;;  %v385_v47 = vadd.f32 %v384_v42, %v383_v30  ;;  %v662_v50 = vrot.slane %v991_v28, 5 }
 0x14f   :  { %v406_v51 = vrot.slane %v405_v41, 1  ;;  %v518_v54 = vrot.slane %v517_v29, 1  ;;  %v496_v55 = vrot.slane %v495_v33, 4  ;;  %v184_v48 = vpop.permute.xlu1 %183  ;;  %v998_v0 = vsel %vm294_vm8, 1.0, %v793_v1 }
 0x150   :  { %vm587_vm10 = vcmp.gt.f32.partialorder %v579_v46, %v492_v45  ;;  %v386_v57 = vrot.slane %v385_v47, 2  ;;  %vm291_vm11 = vcmp.ge.f32.partialorder %v195_v15, %v838_v36  ;;  %v1010_v61 = vsel %vm294_vm8, %v207_v49, 0.0 }
 0x151   :  { %v1002_v58 = vsel %vm587_vm10, 1.0, %v793_v1  ;;  %v1006_v31 = vsel %vm587_vm10, %v555_v4, 0.0  ;;  %v407_v60 = vadd.f32 %v406_v51, %v405_v41  ;;  %v519_v34 = vadd.f32 %v518_v54, %v517_v29 }
 0x152   :  { %v618_v2 = vrot.slane %v1002_v58, 7  ;;  %v387_v3 = vadd.f32 %v386_v57, %v385_v47  ;;  %v497_v12 = vadd.f32 %v496_v55, %v495_v33  ;;  %v658_v13 = vrot.slane %v1006_v31, 7 }
 0x153   :  { %v574_v16 = vmul.f32 %v558_v6, %v407_v60  ;;  %v720_v4 = vsel %vm291_vm11, 1.0, %v793_v1  ;;  %vm270_vm12 = vcmp.ge.f32.partialorder %v93_v38, %v826_v26  ;;  %v218_v5 = vpop.permute.xlu1 %217  ;;  %v467_v19 = vsel %vm291_vm11, %v195_v15, 0.0 }
 0x154   :  { %v388_v17 = vrot.slane %v387_v3, 1  ;;  %v498_v18 = vrot.slane %v497_v12, 2  ;;  %v417_v49 = vadd.f32 %v944_v24, %v720_v4  ;;  %v699_v56 = vsel %vm270_vm12, 1.0, %v793_v1 }
 0x155   :  { %v582_v14 = vadd.f32 1.0, %v574_v16  ;;  %v446_v21 = vsel %vm270_vm12, %v93_v38, 0.0  ;;  %vm289_vm13 = vcmp.ge.f32.partialorder %v184_v48, %v836_v35  ;;  %v365_v32 = vadd.f32 %v699_v56, %v918_v52 }
 0x156   :  { %v389_v22 = vadd.f32 %v388_v17, %v387_v3  ;;  %v499_v30 = vadd.f32 %v498_v18, %v497_v12  ;;  %v477_v26 = vadd.f32 %v920_v53, %v446_v21  ;;  %v718_v37 = vsel %vm289_vm13, 1.0, %v793_v1 }
 0x157   :  { %vm590_vm14 = vcmp.gt.f32.partialorder %v582_v14, %v519_v34  ;;  %v465_v7 = vsel %vm289_vm13, %v184_v48, 0.0  ;;  %vm296_vm15 = vcmp.ge.f32.partialorder %v218_v5, %v841_v39  ;;  %v203_v24 = vpop.permute.xlu1 %202  ;;  %v529_v40 = vadd.f32 %v948_v25, %v467_v19 }
 0x158   :  { %v1031_v15 = vsel %vm590_vm14, 1.0, %v793_v1  ;;  %v500_v38 = vrot.slane %v499_v30, 1  ;;  %v572_v35 = vmul.f32 %v556_v9, %v389_v22  ;;  %v366_v52 = vrot.slane %v365_v32, 4 }
 0x159   :  { %v478_v42 = vrot.slane %v477_v26, 4  ;;  %v409_v53 = vadd.f32 %v718_v37, %v964_v63  ;;  %v521_v33 = vadd.f32 %v966_v62, %v465_v7  ;;  %v725_v45 = vsel %vm296_vm15, 1.0, %v793_v1 }
 0x15a   :  { %v501_v41 = vadd.f32 %v500_v38, %v499_v30  ;;  %v580_v29 = vadd.f32 1.0, %v572_v35  ;;  %v472_v46 = vsel %vm296_vm15, %v218_v5, 0.0  ;;  %v367_v47 = vadd.f32 %v366_v52, %v365_v32 }
 0x15b   :  { %v479_v51 = vadd.f32 %v478_v42, %v477_v26  ;;  %v410_v54 = vadd.f32 %v973_v20, %v409_v53  ;;  %v522_v55 = vadd.f32 %v521_v33, %v978_v27  ;;  %v222_v48 = vpop.permute.xlu1 %221  ;;  %v1044_v25 = vsel %vm590_vm14, %v558_v6, 0.0 }
 0x15c   :  { %vm588_vm0 = vcmp.gt.f32.partialorder %v580_v29, %v501_v41  ;;  %v426_v63 = vadd.f32 %v725_v45, %v953_v23  ;;  %vm293_vm1 = vcmp.ge.f32.partialorder %v203_v24, %v838_v36  ;;  %v368_v57 = vrot.slane %v367_v47, 2 }
 0x15d   :  { %v1049_v62 = vsel %vm588_vm0, 1.0, %v793_v1  ;;  %v480_v60 = vrot.slane %v479_v51, 2  ;;  %v538_v20 = vadd.f32 %v472_v46, %v961_v59  ;;  %v1055_v3 = vsel %vm588_vm0, %v556_v9, 0.0 }
 0x15e   :  { %v621_v27 = vrot.slane %v1049_v62, 6  ;;  %v411_v6 = vrot.slane %v410_v54, 4  ;;  %v523_v34 = vrot.slane %v522_v55, 4  ;;  %v369_v12 = vadd.f32 %v368_v57, %v367_v47 }
 0x15f   :  { %v481_v16 = vadd.f32 %v480_v60, %v479_v51  ;;  %v722_v23 = vsel %vm293_vm1, 1.0, %v793_v1  ;;  %v469_v36 = vsel %vm293_vm1, %v203_v24, 0.0  ;;  %v226_v4 = vpop.permute.xlu1 %225  ;;  %vm297_vm3 = vcmp.ge.f32.partialorder %v222_v48, %v841_v39 }
 0x160   :  { %v412_v5 = vadd.f32 %v411_v6, %v410_v54  ;;  %v524_v17 = vadd.f32 %v523_v34, %v522_v55  ;;  %v418_v18 = vadd.f32 %v722_v23, %v417_v49  ;;  %v530_v19 = vadd.f32 %v529_v40, %v469_v36 }
 0x161   :  { %v370_v59 = vrot.slane %v369_v12, 1  ;;  %v482_v14 = vrot.slane %v481_v16, 1  ;;  %vm298_vm4 = vcmp.ge.f32.partialorder %v226_v4, %v841_v39  ;;  %vm622_vm5 = vcmask 1042434  }
 0x162   :  { %v413_v9 = vrot.slane %v412_v5, 2  ;;  %v525_v56 = vrot.slane %v524_v17, 2  ;;  %v419_v21 = vadd.f32 %v998_v0, %v418_v18  ;;  %v531_v22 = vadd.f32 %v530_v19, %v1010_v61 }
 0x163   :  { %vm625_vm6 = vcmask 1043459   ;;  %v660_v30 = vrot.slane %v1055_v3, 6  ;;  %v371_v32 = vadd.f32 %v370_v59, %v369_v12  ;;  %v726_v49 = vsel %vm297_vm3, 1.0, %v793_v1 }
 0x164   :  { %v473_v26 = vsel %vm297_vm3, %v222_v48, 0.0  ;;  %vm628_vm7 = vcmask 1044484   ;;  %v414_v37 = vadd.f32 %v413_v9, %v412_v5  ;;  %v526_v7 = vadd.f32 %v525_v56, %v524_v17 }
 0x165   :  { %v420_v24 = vrot.slane %v419_v21, 4  ;;  %v532_v38 = vrot.slane %v531_v22, 4  ;;  %v483_v35 = vadd.f32 %v482_v14, %v481_v16  ;;  %v570_v40 = vmul.f32 %v371_v32, %v817_v8 }
 0x166   :  { %v427_v52 = vadd.f32 %v726_v49, %v426_v63  ;;  %v727_v0 = vsel %vm298_vm4, 1.0, %v793_v1  ;;  %v415_v61 = vrot.slane %v414_v37, 1  ;;  %v527_v42 = vrot.slane %v526_v7, 1 }
 0x167   :  { %v421_v53 = vadd.f32 %v420_v24, %v419_v21  ;;  %v533_v33 = vadd.f32 %v532_v38, %v531_v22  ;;  %v578_v41 = vadd.f32 1.0, %v570_v40  ;;  %v539_v29 = vadd.f32 %v538_v20, %v473_v26 }
 0x168   :  { %v428_v45 = vadd.f32 %v727_v0, %v427_v52  ;;  %v474_v46 = vsel %vm298_vm4, %v226_v4, 0.0  ;;  %v416_v47 = vadd.f32 %v415_v61, %v414_v37  ;;  %vm631_vm8 = vcmask 1045509  }
 0x169   :  { %v422_v51 = vrot.slane %v421_v53, 2  ;;  %v534_v54 = vrot.slane %v533_v33, 2  ;;  %v664_v55 = vrot.slane %v1044_v25, 4  ;;  %vm586_vm9 = vcmp.gt.f32.partialorder %v578_v41, %v483_v35 }
 0x16a   :  { %v528_v48 = vadd.f32 %v527_v42, %v526_v7  ;;  %v429_v63 = vrot.slane %v428_v45, 4  ;;  %v540_v57 = vadd.f32 %v539_v29, %v474_v46  ;;  %v728_v60 = vsel %vm586_vm9, 1.0, %v793_v1 }
 0x16b   :  { %v642_v3 = vsel %vm586_vm9, %v817_v8, 0.0  ;;  %v423_v6 = vadd.f32 %v422_v51, %v421_v53  ;;  %v535_v20 = vadd.f32 %v534_v54, %v533_v33  ;;  %v575_v39 = vmul.f32 %v559_v10, %v416_v47 }
 0x16c   :  { %v430_v34 = vadd.f32 %v429_v63, %v428_v45  ;;  %v541_v12 = vrot.slane %v540_v57, 4  ;;  %v659_v16 = vsel %vm619_vm2, %v658_v13, %v642_v3  ;;  %v620_v36 = vsel %vm619_vm2, %v618_v2, %v728_v60 }
 0x16d   :  { %v424_v25 = vrot.slane %v423_v6, 1  ;;  %v661_v23 = vsel %vm622_vm5, %v660_v30, %v659_v16  ;;  %v627_v4 = vrot.slane %v1031_v15, 4  ;;  %v583_v18 = vadd.f32 1.0, %v575_v39 }
 0x16e   :  { %v431_v5 = vrot.slane %v430_v34, 2  ;;  %v542_v17 = vadd.f32 %v541_v12, %v540_v57  ;;  %v663_v19 = vsel %vm625_vm6, %v662_v50, %v661_v23  ;;  %v536_v31 = vrot.slane %v535_v20, 1 }
 0x16f   :  { %v425_v59 = vadd.f32 %v424_v25, %v423_v6  ;;  %v665_v13 = vsel %vm628_vm7, %v664_v55, %v663_v19  ;;  %v623_v14 = vsel %vm622_vm5, %v621_v27, %v620_v36  ;;  %vm591_vm10 = vcmp.gt.f32.partialorder %v583_v18, %v528_v48 }
 0x170   :  { %v432_v58 = vadd.f32 %v431_v5, %v430_v34  ;;  %v543_v9 = vrot.slane %v542_v17, 2  ;;  %v626_v2 = vsel %vm625_vm6, %v624_v44, %v623_v14  ;;  %v647_v50 = vsel %vm591_vm10, %v559_v10, 0.0 }
 0x171   :  { %v576_v28 = vmul.f32 %v560_v11, %v425_v59  ;;  %v733_v15 = vsel %vm591_vm10, 1.0, %v793_v1  ;;  %v629_v56 = vsel %vm628_vm7, %v627_v4, %v626_v2  ;;  %v666_v27 = vrot.slane %v647_v50, 3 }
 0x172   :  { %v433_v62 = vrot.slane %v432_v58, 1  ;;  %v544_v21 = vadd.f32 %v543_v9, %v542_v17  ;;  %v630_v22 = vrot.slane %v733_v15, 3  ;;  %v537_v30 = vadd.f32 %v536_v31, %v535_v20 }
 0x173   :  { %v561_v32 = vrot.slane %v817_v8, 7  ;;  %v584_v43 = vadd.f32 1.0, %v576_v28  ;;  %v667_v26 = vsel %vm631_vm8, %v666_v27, %v665_v13  ;;  %vm634_vm12 = vcmask 1046534  }
 0x174   :  { %v434_v49 = vadd.f32 %v433_v62, %v432_v58  ;;  %v545_v44 = vrot.slane %v544_v21, 1  ;;  %v632_v37 = vsel %vm631_vm8, %v630_v22, %v629_v56  ;;  %vm637_vm14 = vcmask 1047559  }
 0x175   :  { %vm592_vm11 = vcmp.gt.f32.partialorder %v584_v43, %v537_v30 }
 0x176   :  { %v577_v10 = vmul.f32 %v561_v32, %v434_v49  ;;  %v648_v7 = vsel %vm592_vm11, %v560_v11, 0.0  ;;  %v734_v24 = vsel %vm592_vm11, 1.0, %v793_v1  ;;  %v546_v40 = vadd.f32 %v545_v44, %v544_v21 }
 0x177   :  { %v668_v38 = vrot.slane %v648_v7, 2  ;;  %v633_v35 = vrot.slane %v734_v24, 2 }
 0x178   :  { %v585_v52 = vadd.f32 1.0, %v577_v10 }
 0x179   :  { %v669_v0 = vsel %vm634_vm12, %v668_v38, %v667_v26  ;;  %v635_v61 = vsel %vm634_vm12, %v633_v35, %v632_v37 }
 0x17a   :  { %vm593_vm13 = vcmp.gt.f32.partialorder %v585_v52, %v546_v40 }
 0x17b   :  { %v649_v42 = vsel %vm593_vm13, %v561_v32, 0.0  ;;  %v735_v53 = vsel %vm593_vm13, 1.0, %v793_v1 }
 0x17c   :  { %v670_v33 = vrot.slane %v649_v42, 1  ;;  %v636_v41 = vrot.slane %v735_v53, 1 }
 0x17e   :  { %v671_v29 = vsel %vm637_vm14, %v670_v33, %v669_v0  ;;  %v638_v45 = vsel %vm637_vm14, %v636_v41, %v635_v61 }
 0x17f   :  { %673 = vadd.xlane.f32.xlu1 %v671_v29  ;;  %640 = vadd.xlane.f32.xlu0 %v638_v45 }
 0x20c   :  { %v641_v11 = vpop.xlane.xlu0 %640  ;;  %v674_v46 = vpop.xlane.xlu1 %673 }
 0x20d   :  { %741 = vrcp.f32 %v641_v11  ;;  %v736_v47 = vadd.f32 -1.0, %v674_v46 }
 0x217   :  { %v742_v51 = vpop.eup %741 }
 0x218   :  { %v677_v54 = vmul.f32 %v742_v51, %v736_v47 }
 0x21a   :  { %v678_v55 = vsub.f32 %v817_v8, %v677_v54 }
 0x21c   :  { %v679_v48 = vmax.f32 %v678_v55, 0.0 }
 0x21e   :  { %680 = vst [vmem:[#allocation5] sm:$0xff] %v679_v48 }
 0x21f   :  { %776 = shalt.err (!%p773_p12)
}
 0x220   :  { %s777_s22 = scalar_lea.hbm %s1120_s1, 128 }
 0x221   :  { %p778_p13 = scmp.ne.s32.totalorder %s1120_s1, %s777_s22  ;;  %p781_p0 = scmp.lt.u32.totalorder %s777_s22, %s1120_s1 }
 0x223   :  { %p783_p1 = pnand %p781_p0, %p778_p13 }
 0x225   :  { %786 = shalt.err (!%p783_p1)
}
 0x226   :  { %690 = dma.vmem_to_hbm [thread:$0]  %s688_s18, 128, %s1120_s1, [#allocation4]  }
 0x227   :  { %789 = dma.done.wait [#allocation4], 128  }
 0x228   :  { %790 = vsyncadd [#allocation4], 4294967168 }
 0x229   :  { %694 = vsyncpa [#allocation3], 1 }
 0x22a   :  { %695 = vsyncpa [#allocation4], 1 }

</bundles_post_ra>
